<compile_context>
chip_gen: v7x
topology: tpu7x:2x2x1
jax: 0.10.0
libtpu: 0.0.40
codegen_flags: <defaults>
</compile_context>

<pallas_src>
import jax
import jax.numpy as jnp
from jax.experimental import pallas as pl
from jax.experimental.pallas import tpu as pltpu


def _round_up(x, m):
    return ((x + m - 1) // m) * m


def _tile_vmem_bytes(rows, cols, dtype):
    """Padded VMEM footprint of an (rows, cols) tile (sublane 8*, lane 128)."""
    itemsize = jnp.dtype(dtype).itemsize
    packing = max(1, 4 // itemsize)
    return _round_up(rows, 8 * packing) * _round_up(cols, 128) * itemsize


def _make_single_tile_kernel(output_features):
    """Whole d_sae in one weight tile: fused encode+decode, no accumulator."""

    def kernel(x_ref, w_enc_ref, w_dec_ref, b_enc_ref, b_dec_ref, *out_refs):
        dec_ref = out_refs[0]
        pre = jnp.dot(x_ref[...], w_enc_ref[...],
                      preferred_element_type=jnp.float32) + b_enc_ref[...]
        enc = jnp.maximum(pre, 0.0)
        if output_features:
            out_refs[1][...] = enc.astype(out_refs[1].dtype)
        dec = jnp.dot(enc.astype(w_dec_ref.dtype), w_dec_ref[...],
                      preferred_element_type=jnp.float32) + b_dec_ref[...]
        dec_ref[...] = dec.astype(dec_ref.dtype)

    return kernel


def _make_streaming_kernel(output_features):
    """d_sae streamed along grid axis 1; decoded accumulated in f32 scratch."""

    def kernel(x_ref, w_enc_ref, w_dec_ref, b_enc_ref, b_dec_ref, *refs):
        if output_features:
            dec_ref, enc_ref, acc_ref = refs
        else:
            dec_ref, acc_ref = refs
        k = pl.program_id(1)

        pre = jnp.dot(x_ref[...], w_enc_ref[...],
                      preferred_element_type=jnp.float32) + b_enc_ref[...]
        enc = jnp.maximum(pre, 0.0)
        if output_features:
            enc_ref[...] = enc.astype(enc_ref.dtype)

        partial = jnp.dot(enc.astype(w_dec_ref.dtype), w_dec_ref[...],
                          preferred_element_type=jnp.float32)

        @pl.when(k == 0)
        def _():
            acc_ref[...] = partial + b_dec_ref[...]

        @pl.when(k != 0)
        def _():
            acc_ref[...] += partial

        @pl.when(k == pl.num_programs(1) - 1)
        def _():
            dec_ref[...] = acc_ref[...].astype(dec_ref.dtype)

    return kernel


def sae_forward(acts, W_enc, W_dec, b_enc, b_dec, *,
                batch_tile=None, sae_tile=None,
                output_features=True, encoded_dtype=None):
    """Fused SAE encode+decode.

    Returns `decoded` (and `encoded` if output_features=True), matching the
    PyTorch module's forward() functional outputs.
    """
    B, d_in = acts.shape
    d_sae = W_enc.shape[1]
    out_dtype = acts.dtype
    enc_dtype = encoded_dtype if encoded_dtype is not None else out_dtype

    # --- tiling choices ------------------------------------------------------
    x_pack = max(1, 4 // jnp.dtype(acts.dtype).itemsize)      # sublane packing
    if batch_tile is None:
        batch_tile = min(256, _round_up(B, 8 * x_pack))
    if sae_tile is None:
        w_item = jnp.dtype(W_enc.dtype).itemsize
        # Keep double-buffered W_enc + W_dec tiles around ~24 MiB of VMEM so we
        # stay comfortably inside v7x's 64 MiB even with acts/out/acc buffers.
        budget = 24 << 20
        max_tile = budget // max(1, 4 * d_in * w_item)
        max_tile = max(512, (max_tile // 128) * 128)
        sae_tile = d_sae if d_sae <= max_tile else max_tile

    B_p = _round_up(B, batch_tile)
    d_sae_p = _round_up(d_sae, sae_tile)
    single_k = (d_sae_p == sae_tile)

    # --- host-side padding (batch remainder + d_sae remainder) ---------------
    if B_p != B:
        acts = jnp.pad(acts, ((0, B_p - B), (0, 0)))
    if d_sae_p != d_sae:
        W_enc = jnp.pad(W_enc, ((0, 0), (0, d_sae_p - d_sae)))
        W_dec = jnp.pad(W_dec, ((0, d_sae_p - d_sae), (0, 0)))
        b_enc = jnp.pad(b_enc, (0, d_sae_p - d_sae))

    # Fold input centering into the encoder bias (computed once, in f32).
    b_enc_eff = (b_enc.astype(jnp.float32)
                 - jnp.dot(b_dec.astype(jnp.float32),
                           W_enc.astype(jnp.float32))).reshape(1, d_sae_p)
    b_dec2 = b_dec.astype(jnp.float32).reshape(1, d_in)

    # --- grid / specs ---------------------------------------------------------
    if single_k:
        grid = (B_p // batch_tile,)
        in_specs = [
            pl.BlockSpec((batch_tile, d_in), lambda i: (i, 0)),    # acts tile
            pl.BlockSpec((d_in, sae_tile), lambda i: (0, 0)),      # W_enc
            pl.BlockSpec((sae_tile, d_in), lambda i: (0, 0)),      # W_dec
            pl.BlockSpec((1, sae_tile), lambda i: (0, 0)),         # b_enc_eff
            pl.BlockSpec((1, d_in), lambda i: (0, 0)),             # b_dec
        ]
        out_shapes = [jax.ShapeDtypeStruct((B_p, d_in), out_dtype)]
        out_specs = [pl.BlockSpec((batch_tile, d_in), lambda i: (i, 0))]
        if output_features:
            out_shapes.append(jax.ShapeDtypeStruct((B_p, d_sae_p), enc_dtype))
            out_specs.append(
                pl.BlockSpec((batch_tile, sae_tile), lambda i: (i, 0)))
        scratch_shapes = []
        dim_sem = ("parallel",)
        kernel = _make_single_tile_kernel(output_features)
    else:
        grid = (B_p // batch_tile, d_sae_p // sae_tile)
        in_specs = [
            pl.BlockSpec((batch_tile, d_in), lambda i, k: (i, 0)),  # acts tile
            pl.BlockSpec((d_in, sae_tile), lambda i, k: (0, k)),    # W_enc
            pl.BlockSpec((sae_tile, d_in), lambda i, k: (k, 0)),    # W_dec
            pl.BlockSpec((1, sae_tile), lambda i, k: (0, k)),       # b_enc_eff
            pl.BlockSpec((1, d_in), lambda i, k: (0, 0)),           # b_dec
        ]
        out_shapes = [jax.ShapeDtypeStruct((B_p, d_in), out_dtype)]
        out_specs = [pl.BlockSpec((batch_tile, d_in), lambda i, k: (i, 0))]
        if output_features:
            out_shapes.append(jax.ShapeDtypeStruct((B_p, d_sae_p), enc_dtype))
            out_specs.append(
                pl.BlockSpec((batch_tile, sae_tile), lambda i, k: (i, k)))
        scratch_shapes = [pltpu.VMEM((batch_tile, d_in), jnp.float32)]
        dim_sem = ("parallel", "arbitrary")
        kernel = _make_streaming_kernel(output_features)

    # --- explicit VMEM budget: double-buffered tiles (+ f32 accumulator) -----
    vmem = 2 * (_tile_vmem_bytes(batch_tile, d_in, acts.dtype)
                + _tile_vmem_bytes(d_in, sae_tile, W_enc.dtype)
                + _tile_vmem_bytes(sae_tile, d_in, W_dec.dtype)
                + _tile_vmem_bytes(1, sae_tile, jnp.float32)
                + _tile_vmem_bytes(1, d_in, jnp.float32)
                + _tile_vmem_bytes(batch_tile, d_in, out_dtype))
    if output_features:
        vmem += 2 * _tile_vmem_bytes(batch_tile, sae_tile, enc_dtype)
    if not single_k:
        vmem += _tile_vmem_bytes(batch_tile, d_in, jnp.float32)  # accumulator
    vmem_limit = min(max(int(vmem * 1.25) + (2 << 20), 32 << 20), 64 << 20)

    flops = 4 * B_p * d_in * d_sae_p                             # two matmuls
    bytes_accessed = (
        int(acts.size) * acts.dtype.itemsize
        + grid[0] * (int(W_enc.size) * W_enc.dtype.itemsize
                     + int(W_dec.size) * W_dec.dtype.itemsize)
        + B_p * d_in * jnp.dtype(out_dtype).itemsize
        + (B_p * d_sae_p * jnp.dtype(enc_dtype).itemsize
           if output_features else 0))

    outs = pl.pallas_call(
        kernel,
        out_shape=tuple(out_shapes),
        grid_spec=pltpu.PrefetchScalarGridSpec(
            num_scalar_prefetch=0,
            grid=grid,
            in_specs=in_specs,
            out_specs=tuple(out_specs),
            scratch_shapes=scratch_shapes,
        ),
        compiler_params=pltpu.CompilerParams(
            dimension_semantics=dim_sem,
            vmem_limit_bytes=vmem_limit,
        ),
        cost_estimate=pl.CostEstimate(flops=flops, transcendentals=0,
                                      bytes_accessed=bytes_accessed),
    )(acts, W_enc, W_dec, b_enc_eff, b_dec2)

    decoded = outs[0][:B]
    if output_features:
        encoded = outs[1][:B, :d_sae]
        return decoded, encoded
    return decoded


def _reference_forward(acts, W_enc, W_dec, b_enc, b_dec):
    pre = (acts - b_dec) @ W_enc + b_enc
    enc = jnp.maximum(pre, 0.0)
    dec = enc @ W_dec + b_dec
    return dec, enc


if __name__ == "__main__":
    key = jax.random.PRNGKey(0)

    # ---- Case 1: small single-tile problem (module-style shapes) -----------
    B, d_in, d_sae = 16, 32, 64
    k1, k2, k3, k4, k5, key = jax.random.split(key, 6)
    acts = jax.random.normal(k1, (B, d_in), dtype=jnp.float32)
    W_enc = jax.random.normal(k2, (d_in, d_sae), dtype=jnp.float32) * 0.1
    W_dec = jax.random.normal(k3, (d_sae, d_in), dtype=jnp.float32) * 0.1
    b_enc = jax.random.normal(k4, (d_sae,), dtype=jnp.float32) * 0.01
    b_dec = jax.random.normal(k5, (d_in,), dtype=jnp.float32) * 0.01

    dec, enc = sae_forward(acts, W_enc, W_dec, b_enc, b_dec)
    jax.block_until_ready((dec, enc))
    rdec, renc = _reference_forward(acts, W_enc, W_dec, b_enc, b_dec)
    assert dec.shape == (B, d_in) and enc.shape == (B, d_sae)
    assert jnp.allclose(dec, rdec, atol=1e-4, rtol=1e-4)
    assert jnp.allclose(enc, renc, atol=1e-4, rtol=1e-4)

    # ---- Case 2: batch padding (B % tile != 0) + tiled d_sae reduction ------
    B, d_in, d_sae = 20, 128, 256
    k1, k2, k3, k4, k5, key = jax.random.split(key, 6)
    acts = jax.random.normal(k1, (B, d_in), dtype=jnp.float32)
    W_enc = jax.random.normal(k2, (d_in, d_sae), dtype=jnp.float32) * 0.05
    W_dec = jax.random.normal(k3, (d_sae, d_in), dtype=jnp.float32) * 0.05
    b_enc = jax.random.normal(k4, (d_sae,), dtype=jnp.float32) * 0.01
    b_dec = jax.random.normal(k5, (d_in,), dtype=jnp.float32) * 0.01

    dec, enc = sae_forward(acts, W_enc, W_dec, b_enc, b_dec,
                           batch_tile=8, sae_tile=128)
    jax.block_until_ready((dec, enc))
    rdec, renc = _reference_forward(acts, W_enc, W_dec, b_enc, b_dec)
    assert dec.shape == (B, d_in) and enc.shape == (B, d_sae)
    assert jnp.allclose(dec, rdec, atol=1e-4, rtol=1e-4)
    assert jnp.allclose(enc, renc, atol=1e-4, rtol=1e-4)

    # ---- Case 3: decoded-only path (output_features=False), bf16 operands ---
    dec_only = sae_forward(acts.astype(jnp.bfloat16),
                           W_enc.astype(jnp.bfloat16),
                           W_dec.astype(jnp.bfloat16),
                           b_enc, b_dec, output_features=False)
    jax.block_until_ready(dec_only)
    assert dec_only.shape == (B, d_in)
    assert jnp.allclose(dec_only.astype(jnp.float32), rdec,
                        atol=5e-2, rtol=5e-2)

    print("KERNEL_OK")
</pallas_src>

<mosaic_0001>
module attributes {stable_mosaic.version = 11 : i64} {
  func.func @kernel(%arg0: i32, %arg1: memref<16x32xf32, #tpu.memory_space<vmem>>, %arg2: memref<32x64xf32, #tpu.memory_space<vmem>>, %arg3: memref<64x32xf32, #tpu.memory_space<vmem>>, %arg4: memref<1x64xf32, #tpu.memory_space<vmem>>, %arg5: memref<1x32xf32, #tpu.memory_space<vmem>>, %arg6: memref<16x32xf32, #tpu.memory_space<vmem>>, %arg7: memref<16x64xf32, #tpu.memory_space<vmem>>) attributes {dimension_semantics = [#tpu.dimension_semantics<parallel>], iteration_bounds = array<i64: 1>, scalar_prefetch = 0 : i64, scratch_operands = 0 : i64, tpu.core_type = #tpu.core_type<tc>, window_params = [{transform_indices = @transform_0, window_bounds = array<i64: 16, 32>}, {pipeline_mode = #tpu.pipeline_mode<synchronous>, transform_indices = @transform_1, window_bounds = array<i64: 32, 64>}, {pipeline_mode = #tpu.pipeline_mode<synchronous>, transform_indices = @transform_2, window_bounds = array<i64: 64, 32>}, {pipeline_mode = #tpu.pipeline_mode<synchronous>, transform_indices = @transform_3, window_bounds = array<i64: 1, 64>}, {pipeline_mode = #tpu.pipeline_mode<synchronous>, transform_indices = @transform_4, window_bounds = array<i64: 1, 32>}, {transform_indices = @transform_5, window_bounds = array<i64: 16, 32>}, {transform_indices = @transform_6, window_bounds = array<i64: 16, 64>}]} {
    %c0 = arith.constant 0 : index
    %c0_0 = arith.constant 0 : index
    %0 = vector.load %arg1[%c0, %c0_0] : memref<16x32xf32, #tpu.memory_space<vmem>>, vector<16x32xf32>
    %c0_1 = arith.constant 0 : index
    %c0_2 = arith.constant 0 : index
    %1 = vector.load %arg2[%c0_1, %c0_2] : memref<32x64xf32, #tpu.memory_space<vmem>>, vector<32x64xf32>
    %cst = arith.constant dense<0.000000e+00> : vector<16x64xf32>
    %2 = tpu.matmul %0, %1, %cst {dimension_numbers = #tpu.dot_dimension_numbers<[1], [0], [0], [1], [0, 0, 1, 1], [], []>} : vector<16x32xf32>, vector<32x64xf32>, vector<16x64xf32> -> vector<16x64xf32>
    %c0_3 = arith.constant 0 : index
    %c0_4 = arith.constant 0 : index
    %3 = vector.load %arg4[%c0_3, %c0_4] : memref<1x64xf32, #tpu.memory_space<vmem>>, vector<1x64xf32>
    %4 = vector.broadcast %3 : vector<1x64xf32> to vector<16x64xf32>
    %5 = arith.addf %2, %4 : vector<16x64xf32>
    %cst_5 = arith.constant 0.000000e+00 : f32
    %6 = vector.broadcast %cst_5 : f32 to vector<16x64xf32>
    %7 = arith.maximumf %5, %6 : vector<16x64xf32>
    %c0_6 = arith.constant 0 : index
    %c0_7 = arith.constant 0 : index
    %8 = vector.load %arg7[%c0_6, %c0_7] : memref<16x64xf32, #tpu.memory_space<vmem>>, vector<16x64xf32>
    tpu.vector_store %arg7[%c0_6, %c0_7], %7 {strides = array<i32>} : memref<16x64xf32, #tpu.memory_space<vmem>>, vector<16x64xf32>,
    %c0_8 = arith.constant 0 : index
    %c0_9 = arith.constant 0 : index
    %9 = vector.load %arg3[%c0_8, %c0_9] : memref<64x32xf32, #tpu.memory_space<vmem>>, vector<64x32xf32>
    %cst_10 = arith.constant dense<0.000000e+00> : vector<16x32xf32>
    %10 = tpu.matmul %7, %9, %cst_10 {dimension_numbers = #tpu.dot_dimension_numbers<[1], [0], [0], [1], [0, 0, 1, 1], [], []>} : vector<16x64xf32>, vector<64x32xf32>, vector<16x32xf32> -> vector<16x32xf32>
    %c0_11 = arith.constant 0 : index
    %c0_12 = arith.constant 0 : index
    %11 = vector.load %arg5[%c0_11, %c0_12] : memref<1x32xf32, #tpu.memory_space<vmem>>, vector<1x32xf32>
    %12 = vector.broadcast %11 : vector<1x32xf32> to vector<16x32xf32>
    %13 = arith.addf %10, %12 : vector<16x32xf32>
    %c0_13 = arith.constant 0 : index
    %c0_14 = arith.constant 0 : index
    %14 = vector.load %arg6[%c0_13, %c0_14] : memref<16x32xf32, #tpu.memory_space<vmem>>, vector<16x32xf32>
    tpu.vector_store %arg6[%c0_13, %c0_14], %13 {strides = array<i32>} : memref<16x32xf32, #tpu.memory_space<vmem>>, vector<16x32xf32>,
    return
  }
  func.func @transform_0(%arg0: i32) -> (i32, i32) {
    %c0_i32 = arith.constant 0 : i32
    %c0_i32_0 = arith.constant 0 : i32
    return %arg0, %c0_i32 : i32, i32
  }
  func.func @transform_1(%arg0: i32) -> (i32, i32) {
    %c0_i32 = arith.constant 0 : i32
    %c0_i32_0 = arith.constant 0 : i32
    %c0_i32_1 = arith.constant 0 : i32
    return %c0_i32, %c0_i32_0 : i32, i32
  }
  func.func @transform_2(%arg0: i32) -> (i32, i32) {
    %c0_i32 = arith.constant 0 : i32
    %c0_i32_0 = arith.constant 0 : i32
    %c0_i32_1 = arith.constant 0 : i32
    return %c0_i32, %c0_i32_0 : i32, i32
  }
  func.func @transform_3(%arg0: i32) -> (i32, i32) {
    %c0_i32 = arith.constant 0 : i32
    %c0_i32_0 = arith.constant 0 : i32
    %c0_i32_1 = arith.constant 0 : i32
    return %c0_i32, %c0_i32_0 : i32, i32
  }
  func.func @transform_4(%arg0: i32) -> (i32, i32) {
    %c0_i32 = arith.constant 0 : i32
    %c0_i32_0 = arith.constant 0 : i32
    %c0_i32_1 = arith.constant 0 : i32
    return %c0_i32, %c0_i32_0 : i32, i32
  }
  func.func @transform_5(%arg0: i32) -> (i32, i32) {
    %c0_i32 = arith.constant 0 : i32
    %c0_i32_0 = arith.constant 0 : i32
    return %arg0, %c0_i32 : i32, i32
  }
  func.func @transform_6(%arg0: i32) -> (i32, i32) {
    %c0_i32 = arith.constant 0 : i32
    %c0_i32_0 = arith.constant 0 : i32
    return %arg0, %c0_i32 : i32, i32
  }
}

</mosaic_0001>

<bundles_post_ra>
// kernel: tpu_custom_call.1
= control target key start
LH: loop header
LB: loop body
LE: loop exit
PB: predicated region body
PF: predicated region fallthrough
CT: control target
= control target key end

     0   :  { %12 = vsyncpa [#allocation3], 0  ;;  %vm37_vm0 = vcmask 261120   ;;  %s497_s0 = inlined_call_operand.vmem [shape: f32[16,32], index: 0, kind: input, shape index: {}]   ;;  %s498_s1 = inlined_call_operand.vmem [shape: f32[32,64], index: 1, kind: input, shape index: {}]   ;;  %s499_s2 = inlined_call_operand.vmem [shape: f32[64,32], index: 2, kind: input, shape index: {}]   ;;  %s500_s3 = inlined_call_operand.vmem [shape: f32[1,64], index: 3, kind: input, shape index: {}]   ;;  %s501_s4 = inlined_call_operand.vmem [shape: f32[1,32], index: 4, kind: input, shape index: {}]   ;;  %s502_s5 = inlined_call_operand.hbm [shape: f32[16,32], index: 5, kind: output, shape index: {0}]   ;;  %s503_s6 = inlined_call_operand.hbm [shape: f32[16,64], index: 6, kind: output, shape index: {1}]  }
   0x1   :  { %v26_v0 = vld [vmem:[%s498_s1] sm:$0xff]  ;;  %v27_v1 = vld [vmem:[%s498_s1 + $0x8] sm:$0xff]  ;;  %v28_v2 = vld [vmem:[%s498_s1 + $0x10] sm:$0xff] }
   0x2   :  { %v306_v3 = vpack.c.bf16 %v27_v1, %v26_v0  ;;  %v29_v4 = vld [vmem:[%s498_s1 + $0x18] sm:$0xff]  ;;  %v24_v5 = vld [vmem:[%s497_s0] sm:$0xff]  ;;  %v125_v8 = vld [vmem:[%s499_s2 + $0x8] sm:$0xff] }
   0x3   :  { %v310_v6 = vpack.c.bf16 %v29_v4, %v28_v2  ;;  %284 = vmatprep.mubr.msk.f32.mxu0 %vm37_vm0, %v24_v5  ;;  %v124_v7 = vld [vmem:[%s499_s2] sm:$0xff]  ;;  %v126_v9 = vld [vmem:[%s499_s2 + $0x10] sm:$0xff]  ;;  %v127_v11 = vld [vmem:[%s499_s2 + $0x18] sm:$0xff] }
   0x4   :  { %307 = vmatprep.subr.bf16.mxu0 %v306_v3  ;;  %v314_v10 = vpack.c.bf16 %v125_v8, %v124_v7  ;;  %v318_v12 = vpack.c.bf16 %v127_v11, %v126_v9  ;;  %v128_v13 = vld [vmem:[%s499_s2 + $0x20] sm:$0xff]  ;;  %v129_v14 = vld [vmem:[%s499_s2 + $0x28] sm:$0xff] }
   0x5   :  { %309 = vmatpush3.bf16.msra.mxu0 %v306_v3 }
   0x6   :  { %13 = vsyncpa [#allocation5], 0  ;;  %311 = vmatprep.subr.bf16.mxu0 %v310_v6  ;;  %315 = vmatprep.subr.bf16.mxu1 %v314_v10  ;;  %v322_v15 = vpack.c.bf16 %v129_v14, %v128_v13  ;;  %v25_v16 = vld [vmem:[%s497_s0 + $0x8] sm:$0xff]  ;;  %v130_v17 = vld [vmem:[%s499_s2 + $0x30] sm:$0xff]  ;;  %vm121_vm1 = vcmask 523264   ;;  %s382_s0 = smov [#allocation4]  }
   0x7   :  { %317 = vmatpush3.bf16.msra.mxu1 %v314_v10  ;;  %v131_v18 = vld [vmem:[%s499_s2 + $0x38] sm:$0xff]  ;;  %v254_v20 = vld [vmem:[%s500_s3] ss:$0 sm:$0xff]  ;;  %s239_s2 = sshll.u32 %s382_s0, 4  ;;  %s240_s2 = int_to_ptr.vmem [resolvable:$true] %s239_s2 }
   0x8   :  { %319 = vmatprep.subr.bf16.mxu1 %v318_v12  ;;  %v326_v19 = vpack.c.bf16 %v131_v18, %v130_v17  ;;  %s334_s26 = scalar_lea.vmem %s240_s2, 256  ;;  %p339_p1 = scmp.lt.s32.totalorder %s240_s2, %s240_s2 }
   0x9   :  { %313 = vmatpush3.bf16.msra.mxu0 %v310_v6  ;;  %p335_p0 = scmp.ne.s32.totalorder %s240_s2, %s334_s26  ;;  %p340_p2 = scmp.lt.s32.totalorder %s334_s26, %s334_s26 }
   0xb   :  { %321 = vmatpush3.bf16.msra.mxu1 %v318_v12  ;;  %p341_p3 = por %p340_p2, %p339_p1 }
   0xc   :  { %285 = vmatmul.mubr.msk.f32.vlgmr.msra.gmra.mrb[0].mxu0 %vm37_vm0, %v25_v16  ;;  %323 = vmatprep.subr.bf16.mxu1 %v322_v15 }
   0xd   :  { %p342_p4 = pnand %p341_p3, %p335_p0 }
   0xf   :  { %325 = vmatpush3.bf16.msra.mxu1 %v322_v15 }
  0x10   :  { %327 = vmatprep.subr.bf16.mxu1 %v326_v19 }
  0x13   :  { %329 = vmatpush3.bf16.msra.mxu1 %v326_v19 }
  0xdf   :  { %v286_v21 = vpop.f32.mrb[0].mxu0 }
  0xe0   :  { %v116_v22 = vadd.f32 %v286_v21, %v254_v20  ;;  %v110_v23 = vpop.f32.mrb[1].mxu0 }
  0xe1   :  { %v111_v24 = vadd.f32 %v254_v20, %v110_v23 }
  0xe2   :  { %v120_v25 = vmax.f32 %v116_v22, 0.0 }
  0xe3   :  { %v119_v26 = vmax.f32 %v111_v24, 0.0 }
  0xe4   :  { %123 = vst.msk [vmem:[#allocation4 + $0x8] sm:$0xff] %vm121_vm1, %v120_v25 }
  0xe5   :  { %122 = vst.msk [vmem:[#allocation4] sm:$0xff] %vm121_vm1, %v119_v26  ;;  %303 = vmatprep.mubr.msk.f32.mxu1 %vm121_vm1, %v119_v26 }
  0xe6   :  { %304 = vmatmul.mubr.msk.f32.vlgmr.msra.gmra.mrb[0].mxu1 %vm121_vm1, %v120_v25 }
  0xe7   :  { %345 = shalt.err (!%p342_p4)
}
  0xe8   :  { %s346_s28 = scalar_lea.hbm %s503_s6, 256 }
  0xe9   :  { %p347_p5 = scmp.ne.s32.totalorder %s503_s6, %s346_s28  ;;  %p350_p6 = scmp.lt.u32.totalorder %s346_s28, %s503_s6 }
  0xeb   :  { %p352_p7 = pnand %p350_p6, %p347_p5 }
  0xed   :  { %355 = shalt.err (!%p352_p7)
}
  0xee   :  { %s383_s9 = smov 128   ;;  %s384_s10 = smov 8   ;;  %v257_v27 = vld [vmem:[%s501_s4] ss:$0 sm:$0xff] }
  0xef   :  { %245 = dma.vmem_to_hbm [thread:$0]  %s240_s2, 256, %s503_s6, [#allocation5], %s383_s9, %s383_s9, %s384_s10  }
  0xf0   :  { %s385_s14 = smov [#allocation2]  }
  0xf1   :  { %s227_s15 = sshll.u32 %s385_s14, 4  ;;  %s228_s15 = int_to_ptr.vmem [resolvable:$true] %s227_s15 }
  0xf2   :  { %s356_s16 = scalar_lea.vmem %s228_s15, 256  ;;  %p361_p9 = scmp.lt.s32.totalorder %s228_s15, %s228_s15 }
  0xf3   :  { %p357_p8 = scmp.ne.s32.totalorder %s228_s15, %s356_s16  ;;  %p362_p10 = scmp.lt.s32.totalorder %s356_s16, %s356_s16 }
  0xf5   :  { %p363_p11 = por %p362_p10, %p361_p9 }
  0xf7   :  { %p364_p12 = pnand %p363_p11, %p357_p8 }
 0x1b9   :  { %v305_v28 = vpop.f32.mrb[0].mxu1 }
 0x1ba   :  { %v217_v29 = vadd.f32 %v305_v28, %v257_v27  ;;  %v211_v30 = vpop.f32.mrb[1].mxu1 }
 0x1bb   :  { %v212_v31 = vadd.f32 %v257_v27, %v211_v30 }
 0x1bc   :  { %221 = vst.msk [vmem:[#allocation2 + $0x8] sm:$0xff] %vm37_vm0, %v217_v29 }
 0x1bd   :  { %220 = vst.msk [vmem:[#allocation2] sm:$0xff] %vm37_vm0, %v212_v31 }
 0x1be   :  { %367 = shalt.err (!%p364_p12)
}
 0x1bf   :  { %s368_s17 = scalar_lea.hbm %s502_s5, 256 }
 0x1c0   :  { %p369_p13 = scmp.ne.s32.totalorder %s502_s5, %s368_s17  ;;  %p372_p0 = scmp.lt.u32.totalorder %s368_s17, %s502_s5 }
 0x1c2   :  { %p374_p1 = pnand %p372_p0, %p369_p13 }
 0x1c4   :  { %377 = shalt.err (!%p374_p1)
}
 0x1c5   :  { %233 = dma.vmem_to_hbm [thread:$0]  %s228_s15, 256, %s502_s5, [#allocation3], %s383_s9, %s383_s9, %s384_s10  }
 0x1c6   :  { %378 = dma.done.wait [#allocation3], 256  }
 0x1c7   :  { %379 = vsyncadd [#allocation3], 4294967040 }
 0x1c8   :  { %380 = dma.done.wait [#allocation5], 256  }
 0x1c9   :  { %381 = vsyncadd [#allocation5], 4294967040 }
 0x1ca   :  { %252 = vsyncpa [#allocation3], 1 }
 0x1cb   :  { %253 = vsyncpa [#allocation5], 1 }

</bundles_post_ra>
